<compile_context>
chip_gen: v7x
topology: tpu7x:2x2x1
jax: 0.10.0
libtpu: 0.0.40
codegen_flags: <defaults>
</compile_context>

<pallas_src>
import jax
import jax.numpy as jnp
from jax.experimental import pallas as pl
from jax.experimental.pallas import tpu as pltpu


def _round_up(x: int, m: int) -> int:
    return ((x + m - 1) // m) * m


def _make_kernel(num_classes: int, epsilon: float, tk: int, k_true: int,
                 mask_classes: bool):
    one_minus_eps = 1.0 - float(epsilon)
    eps_over_k = float(epsilon) / float(num_classes)
    neg_inf = float("-inf")

    def kernel(logits_ref, labels_ref, out_ref, m_ref, s_ref, lin_ref):
        k = pl.program_id(1)
        nk = pl.num_programs(1)

        @pl.when(k == 0)
        def _init():
            m_ref[...] = jnp.full_like(m_ref, neg_inf)
            s_ref[...] = jnp.zeros_like(s_ref)
            lin_ref[...] = jnp.zeros_like(lin_ref)

        x = logits_ref[...].astype(jnp.float32)              # (TB, TK)
        labels = labels_ref[...]                             # (TB, 1) int32

        col = jax.lax.broadcasted_iota(jnp.int32, x.shape, 1) + k * tk

        if mask_classes:
            valid = col < k_true
            x_exp = jnp.where(valid, x, neg_inf)             # for max / exp
            x_sum = jnp.where(valid, x, 0.0)                 # for eps/K uniform term
        else:
            x_exp = x
            x_sum = x

        # Online log-sum-exp along the class (lane) axis, keepdims row vectors.
        m_prev = m_ref[...]
        m_new = jnp.maximum(m_prev, jnp.max(x_exp, axis=1, keepdims=True))
        s_ref[...] = (s_ref[...] * jnp.exp(m_prev - m_new)
                      + jnp.sum(jnp.exp(x_exp - m_new), axis=1, keepdims=True))
        m_ref[...] = m_new

        # Fused linear term: (eps/K) * sum_j x_ij + (1-eps) * x[i, label_i].
        lin_ref[...] += (
            eps_over_k * jnp.sum(x_sum, axis=1, keepdims=True)
            + one_minus_eps * jnp.sum(jnp.where(col == labels, x, 0.0),
                                      axis=1, keepdims=True))

        @pl.when(k == nk - 1)
        def _finalize():
            lse = m_ref[...] + jnp.log(s_ref[...])           # (TB, 1)
            out_ref[...] = (lse - lin_ref[...]).astype(out_ref.dtype)

    return kernel


def cross_entropy_label_smooth(logits, labels, num_classes, epsilon=0.1,
                               *, tb=256, tk=2048):
    """logits: (B, K) float, labels: (B,) int class indices. Returns scalar f32."""
    B, K = logits.shape
    assert K == num_classes

    # Tile sizes: lane-dense (TK multiple of 128), TB multiple of 8, sized well
    # under v7x's 64 MiB VMEM even with double-buffering.
    tk = _round_up(min(tk, _round_up(K, 128)), 128)
    tb = _round_up(min(tb, _round_up(B, 8)), 8)
    K_pad = _round_up(K, tk)
    B_pad = _round_up(B, tb)
    mask_classes = (K_pad != K)

    if (K_pad != K) or (B_pad != B):
        logits_p = jnp.zeros((B_pad, K_pad), logits.dtype).at[:B, :K].set(logits)
    else:
        logits_p = logits
    labels_p = jnp.zeros((B_pad, 1), jnp.int32).at[:B, 0].set(
        labels.astype(jnp.int32))

    kernel = _make_kernel(num_classes, epsilon, tk, K, mask_classes)
    grid = (B_pad // tb, K_pad // tk)

    per_row = pl.pallas_call(
        kernel,
        out_shape=jax.ShapeDtypeStruct((B_pad, 1), jnp.float32),
        grid_spec=pltpu.PrefetchScalarGridSpec(
            num_scalar_prefetch=0,
            grid=grid,
            in_specs=[
                pl.BlockSpec((tb, tk), lambda i, k: (i, k)),   # logits tile
                pl.BlockSpec((tb, 1), lambda i, k: (i, 0)),    # labels tile
            ],
            out_specs=pl.BlockSpec((tb, 1), lambda i, k: (i, 0)),
            scratch_shapes=[pltpu.VMEM((tb, 1), jnp.float32)] * 3,  # m, s, lin
        ),
        compiler_params=pltpu.CompilerParams(
            dimension_semantics=("parallel", "arbitrary")),
    )(logits_p, labels_p)

    # Tiny final reduction outside the kernel; multiply by precomputed 1/B.
    return jnp.sum(per_row[:B, 0]) * (1.0 / B)


def _reference(logits, labels, num_classes, epsilon=0.1):
    x = logits.astype(jnp.float32)
    log_probs = jax.nn.log_softmax(x, axis=1)
    onehot = jax.nn.one_hot(labels, num_classes, dtype=jnp.float32)
    t = (1.0 - epsilon) * onehot + epsilon / num_classes
    return jnp.sum(jnp.mean(-t * log_probs, axis=0))


if __name__ == "__main__":
    epsilon = 0.1
    key = jax.random.PRNGKey(0)

    # Test 1: tiny shape implied by the module (single grid step, padded lanes).
    batch, num_classes = 8, 16
    k1, k2 = jax.random.split(key)
    logits = jax.random.normal(k1, (batch, num_classes), dtype=jnp.float32)
    labels = jax.random.randint(k2, (batch,), 0, num_classes, dtype=jnp.int32)

    loss = cross_entropy_label_smooth(logits, labels, num_classes, epsilon)
    loss = jax.block_until_ready(loss)
    ref = _reference(logits, labels, num_classes, epsilon)
    assert jnp.allclose(loss, ref, atol=1e-5, rtol=1e-5), (loss, ref)

    # Test 2: exercises batch tiling, class-axis streaming (online LSE) and the
    # padded-class masking path (K=200 -> padded to 256, two 128-wide tiles).
    batch2, num_classes2 = 24, 200
    k3, k4 = jax.random.split(k2)
    logits2 = jax.random.normal(k3, (batch2, num_classes2), dtype=jnp.float32)
    labels2 = jax.random.randint(k4, (batch2,), 0, num_classes2, dtype=jnp.int32)

    loss2 = cross_entropy_label_smooth(logits2, labels2, num_classes2, epsilon,
                                       tb=8, tk=128)
    loss2 = jax.block_until_ready(loss2)
    ref2 = _reference(logits2, labels2, num_classes2, epsilon)
    assert jnp.allclose(loss2, ref2, atol=1e-5, rtol=1e-5), (loss2, ref2)

    print("KERNEL_OK")
</pallas_src>

<mosaic_0001>
module attributes {stable_mosaic.version = 11 : i64} {
  func.func @kernel(%arg0: i32, %arg1: i32, %arg2: memref<8x128xf32, #tpu.memory_space<vmem>>, %arg3: memref<8x1xi32, #tpu.memory_space<vmem>>, %arg4: memref<8x1xf32, #tpu.memory_space<vmem>>, %arg5: memref<8x1xf32, #tpu.memory_space<vmem>>, %arg6: memref<8x1xf32, #tpu.memory_space<vmem>>, %arg7: memref<8x1xf32, #tpu.memory_space<vmem>>) attributes {dimension_semantics = [#tpu.dimension_semantics<parallel>, #tpu.dimension_semantics<arbitrary>], iteration_bounds = array<i64: 1, 1>, scalar_prefetch = 0 : i64, scratch_operands = 3 : i64, tpu.core_type = #tpu.core_type<tc>, window_params = [{transform_indices = @transform_0, window_bounds = array<i64: 8, 128>}, {transform_indices = @transform_1, window_bounds = array<i64: 8, 1>}, {transform_indices = @transform_2, window_bounds = array<i64: 8, 1>}]} {
    %c0_i32 = arith.constant 0 : i32
    %0 = arith.cmpi eq, %arg1, %c0_i32 : i32
    %1 = arith.extui %0 : i1 to i32
    %c0_i32_0 = arith.constant 0 : i32
    %2 = arith.cmpi ne, %1, %c0_i32_0 : i32
    scf.if %2 {
      %cst_26 = arith.constant 0xFF800000 : f32
      %50 = vector.broadcast %cst_26 : f32 to vector<8x1xf32>
      %c0_27 = arith.constant 0 : index
      %c0_28 = arith.constant 0 : index
      %51 = vector.load %arg5[%c0_27, %c0_28] : memref<8x1xf32, #tpu.memory_space<vmem>>, vector<8x1xf32>
      tpu.vector_store %arg5[%c0_27, %c0_28], %50 {strides = array<i32>} : memref<8x1xf32, #tpu.memory_space<vmem>>, vector<8x1xf32>,
      %cst_29 = arith.constant 0.000000e+00 : f32
      %52 = vector.broadcast %cst_29 : f32 to vector<8x1xf32>
      %c0_30 = arith.constant 0 : index
      %c0_31 = arith.constant 0 : index
      %53 = vector.load %arg6[%c0_30, %c0_31] : memref<8x1xf32, #tpu.memory_space<vmem>>, vector<8x1xf32>
      tpu.vector_store %arg6[%c0_30, %c0_31], %52 {strides = array<i32>} : memref<8x1xf32, #tpu.memory_space<vmem>>, vector<8x1xf32>,
      %cst_32 = arith.constant 0.000000e+00 : f32
      %54 = vector.broadcast %cst_32 : f32 to vector<8x1xf32>
      %c0_33 = arith.constant 0 : index
      %c0_34 = arith.constant 0 : index
      %55 = vector.load %arg7[%c0_33, %c0_34] : memref<8x1xf32, #tpu.memory_space<vmem>>, vector<8x1xf32>
      tpu.vector_store %arg7[%c0_33, %c0_34], %54 {strides = array<i32>} : memref<8x1xf32, #tpu.memory_space<vmem>>, vector<8x1xf32>,
    } else {
    }
    %c0 = arith.constant 0 : index
    %c0_1 = arith.constant 0 : index
    %3 = vector.load %arg2[%c0, %c0_1] : memref<8x128xf32, #tpu.memory_space<vmem>>, vector<8x128xf32>
    %c0_2 = arith.constant 0 : index
    %c0_3 = arith.constant 0 : index
    %4 = vector.load %arg3[%c0_2, %c0_3] : memref<8x1xi32, #tpu.memory_space<vmem>>, vector<8x1xi32>
    %5 = tpu.iota {dimensions = array<i32: 1>} : vector<8x128xi32>
    %c128_i32 = arith.constant 128 : i32
    %6 = arith.muli %arg1, %c128_i32 : i32
    %7 = vector.broadcast %6 : i32 to vector<8x128xi32>
    %8 = arith.addi %5, %7 : vector<8x128xi32>
    %c16_i32 = arith.constant 16 : i32
    %9 = vector.broadcast %c16_i32 : i32 to vector<8x128xi32>
    %10 = arith.cmpi slt, %8, %9 : vector<8x128xi32>
    %cst = arith.constant 0xFF800000 : f32
    %11 = vector.broadcast %cst : f32 to vector<8x128xf32>
    %12 = arith.select %10, %3, %11 : vector<8x128xi1>, vector<8x128xf32>
    %cst_4 = arith.constant 0.000000e+00 : f32
    %13 = vector.broadcast %cst_4 : f32 to vector<8x128xf32>
    %14 = arith.select %10, %3, %13 : vector<8x128xi1>, vector<8x128xf32>
    %c0_5 = arith.constant 0 : index
    %c0_6 = arith.constant 0 : index
    %15 = vector.load %arg5[%c0_5, %c0_6] : memref<8x1xf32, #tpu.memory_space<vmem>>, vector<8x1xf32>
    %cst_7 = arith.constant dense<0xFF800000> : vector<8xf32>
    %16 = vector.multi_reduction <maximumf>, %12, %cst_7 [1] : vector<8x128xf32> to vector<8xf32>
    %17 = vector.shape_cast %16 : vector<8xf32> to vector<8x1xf32>
    %18 = arith.maximumf %15, %17 : vector<8x1xf32>
    %c0_8 = arith.constant 0 : index
    %c0_9 = arith.constant 0 : index
    %19 = vector.load %arg6[%c0_8, %c0_9] : memref<8x1xf32, #tpu.memory_space<vmem>>, vector<8x1xf32>
    %20 = arith.subf %15, %18 : vector<8x1xf32>
    %21 = math.exp %20 : vector<8x1xf32>
    %22 = arith.mulf %19, %21 : vector<8x1xf32>
    %23 = vector.broadcast %18 : vector<8x1xf32> to vector<8x128xf32>
    %24 = arith.subf %12, %23 : vector<8x128xf32>
    %25 = math.exp %24 : vector<8x128xf32>
    %cst_10 = arith.constant dense<0.000000e+00> : vector<8xf32>
    %26 = vector.multi_reduction <add>, %25, %cst_10 [1] : vector<8x128xf32> to vector<8xf32>
    %27 = vector.shape_cast %26 : vector<8xf32> to vector<8x1xf32>
    %28 = arith.addf %22, %27 : vector<8x1xf32>
    %c0_11 = arith.constant 0 : index
    %c0_12 = arith.constant 0 : index
    %29 = vector.load %arg6[%c0_11, %c0_12] : memref<8x1xf32, #tpu.memory_space<vmem>>, vector<8x1xf32>
    tpu.vector_store %arg6[%c0_11, %c0_12], %28 {strides = array<i32>} : memref<8x1xf32, #tpu.memory_space<vmem>>, vector<8x1xf32>,
    %c0_13 = arith.constant 0 : index
    %c0_14 = arith.constant 0 : index
    %30 = vector.load %arg5[%c0_13, %c0_14] : memref<8x1xf32, #tpu.memory_space<vmem>>, vector<8x1xf32>
    tpu.vector_store %arg5[%c0_13, %c0_14], %18 {strides = array<i32>} : memref<8x1xf32, #tpu.memory_space<vmem>>, vector<8x1xf32>,
    %c0_15 = arith.constant 0 : index
    %c0_16 = arith.constant 0 : index
    %31 = vector.load %arg7[%c0_15, %c0_16] : memref<8x1xf32, #tpu.memory_space<vmem>>, vector<8x1xf32>
    %cst_17 = arith.constant dense<0.000000e+00> : vector<8xf32>
    %32 = vector.multi_reduction <add>, %14, %cst_17 [1] : vector<8x128xf32> to vector<8xf32>
    %33 = vector.shape_cast %32 : vector<8xf32> to vector<8x1xf32>
    %cst_18 = arith.constant 6.250000e-03 : f32
    %34 = vector.broadcast %cst_18 : f32 to vector<8x1xf32>
    %35 = arith.mulf %34, %33 : vector<8x1xf32>
    %36 = vector.broadcast %4 : vector<8x1xi32> to vector<8x128xi32>
    %37 = arith.cmpi eq, %8, %36 : vector<8x128xi32>
    %cst_19 = arith.constant 0.000000e+00 : f32
    %38 = vector.broadcast %cst_19 : f32 to vector<8x128xf32>
    %39 = arith.select %37, %3, %38 : vector<8x128xi1>, vector<8x128xf32>
    %cst_20 = arith.constant dense<0.000000e+00> : vector<8xf32>
    %40 = vector.multi_reduction <add>, %39, %cst_20 [1] : vector<8x128xf32> to vector<8xf32>
    %41 = vector.shape_cast %40 : vector<8xf32> to vector<8x1xf32>
    %cst_21 = arith.constant 0.899999976 : f32
    %42 = vector.broadcast %cst_21 : f32 to vector<8x1xf32>
    %43 = arith.mulf %42, %41 : vector<8x1xf32>
    %44 = arith.addf %35, %43 : vector<8x1xf32>
    %45 = arith.addf %31, %44 : vector<8x1xf32>
    %c0_22 = arith.constant 0 : index
    %c0_23 = arith.constant 0 : index
    %46 = vector.load %arg7[%c0_22, %c0_23] : memref<8x1xf32, #tpu.memory_space<vmem>>, vector<8x1xf32>
    tpu.vector_store %arg7[%c0_22, %c0_23], %45 {strides = array<i32>} : memref<8x1xf32, #tpu.memory_space<vmem>>, vector<8x1xf32>,
    %c0_i32_24 = arith.constant 0 : i32
    %47 = arith.cmpi eq, %arg1, %c0_i32_24 : i32
    %48 = arith.extui %47 : i1 to i32
    %c0_i32_25 = arith.constant 0 : i32
    %49 = arith.cmpi ne, %48, %c0_i32_25 : i32
    scf.if %49 {
      %c0_26 = arith.constant 0 : index
      %c0_27 = arith.constant 0 : index
      %50 = vector.load %arg5[%c0_26, %c0_27] : memref<8x1xf32, #tpu.memory_space<vmem>>, vector<8x1xf32>
      %c0_28 = arith.constant 0 : index
      %c0_29 = arith.constant 0 : index
      %51 = vector.load %arg6[%c0_28, %c0_29] : memref<8x1xf32, #tpu.memory_space<vmem>>, vector<8x1xf32>
      %52 = math.log %51 : vector<8x1xf32>
      %53 = arith.addf %50, %52 : vector<8x1xf32>
      %c0_30 = arith.constant 0 : index
      %c0_31 = arith.constant 0 : index
      %54 = vector.load %arg7[%c0_30, %c0_31] : memref<8x1xf32, #tpu.memory_space<vmem>>, vector<8x1xf32>
      %55 = arith.subf %53, %54 : vector<8x1xf32>
      %c0_32 = arith.constant 0 : index
      %c0_33 = arith.constant 0 : index
      %56 = vector.load %arg4[%c0_32, %c0_33] : memref<8x1xf32, #tpu.memory_space<vmem>>, vector<8x1xf32>
      tpu.vector_store %arg4[%c0_32, %c0_33], %55 {strides = array<i32>} : memref<8x1xf32, #tpu.memory_space<vmem>>, vector<8x1xf32>,
    } else {
    }
    return
  }
  func.func @transform_0(%arg0: i32, %arg1: i32) -> (i32, i32) {
    %c0_i32 = arith.constant 0 : i32
    return %arg0, %arg1 : i32, i32
  }
  func.func @transform_1(%arg0: i32, %arg1: i32) -> (i32, i32) {
    %c0_i32 = arith.constant 0 : i32
    %c0_i32_0 = arith.constant 0 : i32
    return %arg0, %c0_i32 : i32, i32
  }
  func.func @transform_2(%arg0: i32, %arg1: i32) -> (i32, i32) {
    %c0_i32 = arith.constant 0 : i32
    %c0_i32_0 = arith.constant 0 : i32
    return %arg0, %c0_i32 : i32, i32
  }
}

</mosaic_0001>

<bundles_post_ra>
// kernel: tpu_custom_call.1
= control target key start
LH: loop header
LB: loop body
LE: loop exit
PB: predicated region body
PF: predicated region fallthrough
CT: control target
= control target key end

     0   :  { %v21_v0 = vlaneseq  ;;  %vm15_vm0 = vcmask 7168   ;;  %v93_v1 = vmov -inf   ;;  %v94_v5 = vmov 0   ;;  %s129_s0 = inlined_call_operand.vmem [shape: f32[8,128], index: 0, kind: input, shape index: {}]   ;;  %s130_s1 = inlined_call_operand.vmem [shape: s32[8,1], index: 1, kind: input, shape index: {}]   ;;  %s131_s2 = inlined_call_operand.vmem [shape: f32[8,1], index: 2, kind: output, shape index: {}]  }
   0x1   :  { %16 = vst.msk [vmem:[#allocation2] sm:$0xff] %vm15_vm0, %v93_v1  ;;  %v19_v2 = vld [vmem:[%s129_s0] sm:$0xff]  ;;  %85 = vset.pattern.permute.xlu0 %v94_v5  ;;  %86 = vset.pattern.permute.xlu1 %v94_v5  ;;  %v95_v6 = vmov 0.0  }
   0x2   :  { %v22_v3 = vand.u32 127, %v21_v0  ;;  %17 = vst.msk [vmem:[#allocation3] sm:$0xff] %vm15_vm0, %v95_v6  ;;  %18 = vst.msk [vmem:[#allocation4] sm:$0xff] %vm15_vm0, %v95_v6  ;;  %v20_v7 = vld [vmem:[%s130_s1] sm:$0xff] }
   0x3   :  { %57 = vperm.xlu1 %86, %v20_v7  }
   0x4   :  { %vm26_vm1 = vcmp.lt.s32.totalorder %v22_v3, 16 }
   0x5   :  { %v27_v4 = vsel %vm26_vm1, %v19_v2, -inf  ;;  %v28_v17 = vsel %vm26_vm1, %v19_v2, 0.0 }
   0x6   :  { %30 = vmax.xlane.f32.xlu0 %v27_v4 }
   0x8   :  { %v29_v8 = vld [vmem:[#allocation2] sm:$0xff] }
   0x9   :  { %v33_v21 = vld [vmem:[#allocation3] sm:$0xff]  ;;  %v52_v30 = vld [vmem:[#allocation4] sm:$0xff] }
  0x82   :  { %v58_v16 = vpop.permute.xlu1 %57 }
  0x83   :  { %vm59_vm2 = vcmp.eq.s32.totalorder %v22_v3, %v58_v16 }
  0x84   :  { %v60_v18 = vsel %vm59_vm2, %v19_v2, 0.0 }
  0x93   :  { %v31_v9 = vpop.xlane.xlu0 %30 }
  0x94   :  { %v32_v10 = vmax.f32 %v29_v8, %v31_v9 }
  0x96   :  { %v34_v11 = vsub.f32 %v29_v8, %v32_v10  ;;  %51 = vst.msk [vmem:[#allocation2] sm:$0xff] %vm15_vm0, %v32_v10  ;;  %40 = vperm.xlu0 %85, %v32_v10  }
  0x98   :  { %v35_v19 = vmul.f32 1.442695, %v34_v11 }
  0x9d   :  { %v70_v35 = vld [vmem:[#allocation2] sm:$0xff] }
 0x115   :  { %v41_v12 = vpop.permute.xlu0 %40 }
 0x116   :  { %v43_v13 = vsub.f32 %v27_v4, %v41_v12 }
 0x118   :  { %v44_v14 = vmul.f32 1.442695, %v43_v13 }
 0x11a   :  { %87 = vpow2.f32 %v44_v14 }
 0x11b   :  { %89 = vpow2.f32 %v35_v19 }
 0x124   :  { %v88_v15 = vpop.eup %87 }
 0x125   :  { %46 = vadd.xlane.f32.xlu1 %v88_v15  ;;  %v90_v20 = vpop.eup %89 }
 0x126   :  { %v37_v22 = vmul.f32 %v90_v20, %v33_v21 }
 0x129   :  { %53 = vadd.xlane.f32.xlu1 %v28_v17 }
 0x12d   :  { %61 = vadd.xlane.f32.xlu1 %v60_v18 }
 0x1b2   :  { %v47_v23 = vpop.xlane.xlu1 %46 }
 0x1b3   :  { %v48_v24 = vadd.f32 %v47_v23, %v37_v22 }
 0x1b5   :  { %50 = vst.msk [vmem:[#allocation3] sm:$0xff] %vm15_vm0, %v48_v24 }
 0x1b6   :  { %v54_v25 = vpop.xlane.xlu1 %53 }
 0x1b7   :  { %v55_v26 = vmul.f32 0.00625, %v54_v25 }
 0x1ba   :  { %v62_v27 = vpop.xlane.xlu1 %61 }
 0x1bb   :  { %v63_v28 = vmul.f32 0.9, %v62_v27 }
 0x1bc   :  { %v71_v29 = vld [vmem:[#allocation3] sm:$0xff] }
 0x1bd   :  { %91 = vlog2.f32 %v71_v29  ;;  %v64_v31 = vadd.f32 %v63_v28, %v55_v26 }
 0x1bf   :  { %v65_v32 = vadd.f32 %v64_v31, %v52_v30 }
 0x1c1   :  { %66 = vst.msk [vmem:[#allocation4] sm:$0xff] %vm15_vm0, %v65_v32 }
 0x1c7   :  { %v92_v33 = vpop.eup %91 }
 0x1c8   :  { %v73_v34 = vmul.f32 0.6931472, %v92_v33  ;;  %v75_v37 = vld [vmem:[#allocation4] sm:$0xff] }
 0x1ca   :  { %v74_v36 = vadd.f32 %v73_v34, %v70_v35 }
 0x1cc   :  { %v76_v38 = vsub.f32 %v74_v36, %v75_v37 }
 0x1ce   :  { %77 = vst.msk [vmem:[%s131_s2] sm:$0xff] %vm15_vm0, %v76_v38 }

</bundles_post_ra>
